<compile_context>
chip_gen: v5e
topology: v5e:2x2
jax: 0.10.0
libtpu: 0.0.40
codegen_flags: <defaults>
</compile_context>

<pallas_src>
import jax
import jax.numpy as jnp
from jax.experimental import pallas as pl
from jax.experimental.pallas import tpu as pltpu

LANES = 128                 # vreg lane width — last dim of every block
MAX_BLOCK_BYTES = 2 << 20   # 2 MiB per block; 2(in/out) x 2(double-buffer) ~ 8 MiB VMEM
MIN_SPLIT_BYTES = 1 << 20   # tensors >= 1 MiB get >= 2 grid steps (v7x megacore)


def _sublanes(itemsize: int) -> int:
    # Native sublane packing per dtype width: f32->8, bf16/f16->16, int8/fp8->32.
    return {4: 8, 2: 16, 1: 32}.get(itemsize, 8)


def mul_kernel(w_ref, x_ref, o_ref):
    # w_ref: (1,) f32 scalar in SMEM; x_ref / o_ref: (tile_rows, 128) in VMEM.
    w = w_ref[0]
    o_ref[...] = (x_ref[...] * w).astype(o_ref.dtype)


def mul_pallas(x, weight):
    """Elementwise x * weight (scalar), any shape, memory-bound Pallas kernel."""
    orig_shape = x.shape
    dtype = x.dtype
    total = int(x.size)

    if total == 0:
        return x

    w = jnp.asarray(weight, jnp.float32).reshape(1)
    flat = jnp.ravel(x)

    main = (total // LANES) * LANES   # 128-aligned prefix handled by the kernel
    tail = total - main               # < 128 leftover elements (plain jnp)

    pieces = []

    if main:
        itemsize = jnp.dtype(dtype).itemsize
        sub = _sublanes(itemsize)
        rows = main // LANES
        main_bytes = main * itemsize

        # Largest block that keeps the double-buffered footprint VMEM-safe
        # on every generation (v5e 16 MiB scoped default is the tightest).
        cap_rows = max(sub, (MAX_BLOCK_BYTES // (LANES * itemsize)) // sub * sub)

        if rows <= cap_rows:
            if main_bytes >= MIN_SPLIT_BYTES and rows >= 2 * sub:
                # Force >= 2 grid steps so v7x's two TensorCores both get work.
                tile_rows = pl.cdiv(pl.cdiv(rows, 2), sub) * sub
            else:
                # Single block == full array dims (always a legal block shape).
                tile_rows = rows
        else:
            tile_rows = cap_rows

        # Ragged last block is handled by Pallas (padded reads, OOB writes dropped).
        grid = (pl.cdiv(rows, tile_rows),)

        x2d = (flat if tail == 0 else flat[:main]).reshape(rows, LANES)

        out2d = pl.pallas_call(
            mul_kernel,
            out_shape=jax.ShapeDtypeStruct((rows, LANES), dtype),
            grid=grid,
            in_specs=[
                pl.BlockSpec(memory_space=pltpu.MemorySpace.SMEM),   # scalar weight
                pl.BlockSpec((tile_rows, LANES), lambda i: (i, 0)),  # x tile
            ],
            out_specs=pl.BlockSpec((tile_rows, LANES), lambda i: (i, 0)),
            compiler_params=pltpu.CompilerParams(
                dimension_semantics=("parallel",)),
        )(w, x2d)
        pieces.append(out2d.reshape(-1))

    if tail:
        # Sub-128-element remainder: cheaper as a plain multiply than padding
        # the whole tensor (which would double/triple HBM traffic).
        pieces.append((flat[main:] * w[0]).astype(dtype))

    out_flat = pieces[0] if len(pieces) == 1 else jnp.concatenate(pieces)
    return out_flat.reshape(orig_shape)


if __name__ == "__main__":
    key = jax.random.PRNGKey(0)
    weight = 0.2  # ffcv_model.py uses Mul(0.2) on the classifier output

    # Main case (matches the module's typical activation shape): 2048 elements,
    # a clean multiple of 128 -> pure kernel path, no padding, no slicing.
    N, C, H, W = 2, 4, 16, 16
    x = jax.random.normal(key, (N, C, H, W), jnp.float32)
    out = jax.block_until_ready(mul_pallas(x, weight))
    ref = x * weight
    assert out.shape == x.shape and out.dtype == x.dtype
    assert jnp.allclose(out, ref, atol=1e-6, rtol=1e-6), float(
        jnp.max(jnp.abs(out - ref)))

    # Ragged case: 8*128 + 37 elements -> kernel prefix + jnp tail.
    x2 = jax.random.normal(jax.random.PRNGKey(1), (1061,), jnp.float32)
    out2 = jax.block_until_ready(mul_pallas(x2, weight))
    assert jnp.allclose(out2, x2 * weight, atol=1e-6, rtol=1e-6)

    # Tiny case (< 128 elements): pure jnp path, no pallas_call emitted.
    x3 = jax.random.normal(jax.random.PRNGKey(2), (3, 5, 7), jnp.float32)
    out3 = jax.block_until_ready(mul_pallas(x3, weight))
    assert jnp.allclose(out3, x3 * weight, atol=1e-6, rtol=1e-6)

    print("KERNEL_OK")
</pallas_src>

<mosaic_0001>
module attributes {stable_mosaic.version = 11 : i64} {
  func.func @mul_kernel(%arg0: i32, %arg1: memref<1xf32, #tpu.memory_space<smem>>, %arg2: memref<16x128xf32, #tpu.memory_space<vmem>>, %arg3: memref<16x128xf32, #tpu.memory_space<vmem>>) attributes {dimension_semantics = [#tpu.dimension_semantics<parallel>], iteration_bounds = array<i64: 1>, scalar_prefetch = 0 : i64, scratch_operands = 0 : i64, tpu.core_type = #tpu.core_type<tc>, window_params = [{transform_indices = @transform_0, window_bounds = array<i64: 1>}, {transform_indices = @transform_1, window_bounds = array<i64: 16, 128>}, {transform_indices = @transform_2, window_bounds = array<i64: 16, 128>}]} {
    %c0 = arith.constant 0 : index
    %0 = memref.load %arg1[%c0] : memref<1xf32, #tpu.memory_space<smem>>
    %c0_0 = arith.constant 0 : index
    %c0_1 = arith.constant 0 : index
    %1 = vector.load %arg2[%c0_0, %c0_1] : memref<16x128xf32, #tpu.memory_space<vmem>>, vector<16x128xf32>
    %2 = vector.broadcast %0 : f32 to vector<16x128xf32>
    %3 = arith.mulf %1, %2 : vector<16x128xf32>
    %c0_2 = arith.constant 0 : index
    %c0_3 = arith.constant 0 : index
    %4 = vector.load %arg3[%c0_2, %c0_3] : memref<16x128xf32, #tpu.memory_space<vmem>>, vector<16x128xf32>
    tpu.vector_store %arg3[%c0_2, %c0_3], %3 {strides = array<i32>} : memref<16x128xf32, #tpu.memory_space<vmem>>, vector<16x128xf32>,
    return
  }
  func.func @transform_0(%arg0: i32) -> i32 {
    %c0_i32 = arith.constant 0 : i32
    %c0_i32_0 = arith.constant 0 : i32
    return %c0_i32 : i32
  }
  func.func @transform_1(%arg0: i32) -> (i32, i32) {
    %c0_i32 = arith.constant 0 : i32
    %c0_i32_0 = arith.constant 0 : i32
    return %arg0, %c0_i32 : i32, i32
  }
  func.func @transform_2(%arg0: i32) -> (i32, i32) {
    %c0_i32 = arith.constant 0 : i32
    %c0_i32_0 = arith.constant 0 : i32
    return %arg0, %c0_i32 : i32, i32
  }
}

</mosaic_0001>

<bundles_post_ra>
// kernel: tpu_custom_call.1
= control target key start
LH: loop header
LB: loop body
LE: loop exit
PB: predicated region body
PF: predicated region fallthrough
CT: control target
= control target key end

     0   :  { %8 = vsyncpa [#allocation4], 0  ;;  %s140_s0 = inlined_call_operand.<no memory space> [shape: f32[1], index: 0, kind: input, shape index: {}]   ;;  %s141_s1 = inlined_call_operand.hbm [shape: f32[16,128], index: 1, kind: input, shape index: {}]   ;;  %s142_s2 = inlined_call_operand.hbm [shape: f32[16,128], index: 2, kind: output, shape index: {}]  }
   0x1   :  { %9 = vsyncpa [#allocation5], 0  ;;  %s16_s11 = sshll.u32 %s141_s1, 4  ;;  %s112_s12 = smov [#allocation3]   ;;  %s17_s11 = int_to_ptr.hbm [resolvable:$true] %s16_s11 }
   0x2   :  { %s18_s13 = sshll.u32 %s112_s12, 4  ;;  %s113_s14 = smov 128   ;;  %s19_s13 = int_to_ptr.vmem [resolvable:$true] %s18_s13 }
   0x3   :  { %s114_s15 = smov 8  }
   0x4   :  { %24 = dma.hbm_to_vmem [thread:$0]  %s17_s11, 256, %s19_s13, [#allocation4], %s113_s14, %s113_s14, %s114_s15  }
   0x5   :  { %108 = dma.done.wait [#allocation4], 256  }
   0x6   :  { %109 = vsyncadd [#allocation4], 4294967040  ;;  %v32_v0 = vstv %s140_s0  ;;  %s115_s18 = smov [#allocation6]   ;;  %s43_s22 = sshll.u32 %s142_s2, 4  ;;  %v30_v1 = vld [vmem:[#allocation3] sm:$0xff]  ;;  %v31_v2 = vld [vmem:[#allocation3 + $0x8] sm:$0xff]  ;;  %s44_s22 = int_to_ptr.hbm [resolvable:$true] %s43_s22 }
   0x7   :  { %s41_s19 = sshll.u32 %s115_s18, 4  ;;  %v33_v3 = vmul.f32 %v32_v0, %v30_v1  ;;  %v34_v4 = vmul.f32 %v32_v0, %v31_v2  ;;  %s42_s19 = int_to_ptr.vmem [resolvable:$true] %s41_s19 }
   0x9   :  { %35 = vst [vmem:[#allocation6] sm:$0xff] %v33_v3 }
   0xa   :  { %36 = vst [vmem:[#allocation6 + $0x8] sm:$0xff] %v34_v4 }
   0xb   :  { %49 = dma.vmem_to_hbm [thread:$0]  %s42_s19, 256, %s44_s22, [#allocation5], %s113_s14, %s113_s14, %s114_s15  }
   0xc   :  { %110 = dma.done.wait [#allocation5], 256  }
   0xd   :  { %111 = vsyncadd [#allocation5], 4294967040 }
   0xe   :  { %54 = vsyncpa [#allocation4], 1 }
   0xf   :  { %55 = vsyncpa [#allocation5], 1 }

</bundles_post_ra>
